<compile_context>
chip_gen: v7x
topology: tpu7x:2x2x1
jax: 0.10.0
libtpu: 0.0.40
codegen_flags: <defaults>
</compile_context>

<pallas_src>
import jax
import jax.numpy as jnp
from jax.experimental import pallas as pl
from jax.experimental.pallas import tpu as pltpu


def _round_up(x, m):
    return ((x + m - 1) // m) * m


def _largest_divisor_leq(n, k):
    k = max(1, min(n, int(k)))
    while n % k:
        k -= 1
    return k


def _choose_blocking(N, C, HW, itemsize, target_bytes, max_bytes,
                     max_batch_block=16):
    """Pick (batch_block, hw_tile) so each x block is ~target_bytes (<= max_bytes)."""
    lane_bytes = max(1, C * itemsize)          # bytes per HW position per item
    item_bytes = lane_bytes * HW               # one item's full (C, HW) slab
    if item_bytes < target_bytes and N > 1:
        # Small feature map: pack several batch items per grid step (full HW).
        bn = _largest_divisor_leq(N, min(max_batch_block,
                                         target_bytes // item_bytes))
        return bn, HW
    if item_bytes <= max_bytes or HW <= 128:
        return 1, HW                           # whole item per step
    # Large feature map: tile HW in 128-lane multiples; partial last block is
    # handled by Pallas (no wrapper pad needed).
    tile = _round_up(max(1, target_bytes // lane_bytes), 128)
    cap = max(128, (max_bytes // lane_bytes) // 128 * 128)
    return 1, max(128, min(tile, cap, (HW // 128) * 128))


def lanet_kernel(x_ref, w1t_ref, b1_ref, w2_ref, b2_ref, o_ref):
    # x_ref:   (Bn, C, T)    activation block (Bn batch items, full C, T lanes)
    # w1t_ref: (Cmid_pad, C) folded conv1 weight (BN1 scale absorbed), resident
    # b1_ref:  (Cmid_pad, 1) folded conv1 bias + BN1 shift
    # w2_ref:  (Cmid_pad, 1) folded conv2 weight (BN2 scale absorbed)
    # b2_ref:  (1,) in SMEM  folded conv2 bias + BN2 shift (scalar)
    # o_ref:   (Bn, 1, T)
    w1t = w1t_ref[...]                     # hoisted out of the batch loop
    b1 = b1_ref[...]
    w2 = w2_ref[...]
    b2 = b2_ref[0]
    for b in range(x_ref.shape[0]):        # static unroll over the batch block
        # conv1 (1x1) as a channel contraction on the MXU, f32 accumulate.
        h = jnp.dot(w1t, x_ref[b], preferred_element_type=jnp.float32)
        h = jnp.maximum(h + b1, 0.0)                              # bias+BN1, ReLU
        # conv2 (1x1, Cmid -> 1) on the VPU/XLU: broadcast FMA + sublane reduce.
        y = jnp.sum(h * w2, axis=0, keepdims=True) + b2           # (1, T)
        o_ref[b] = jax.nn.sigmoid(y).astype(o_ref.dtype)


def lanet_forward(x_nchw, params, *, target_block_bytes=2 << 20,
                  max_block_bytes=4 << 20):
    """LANet forward (eval-mode BN folded). x_nchw: (N, C, H, W), f32 or bf16.
    Returns (N, 1, H, W) in x's dtype."""
    N, C, H, W = x_nchw.shape
    HW = H * W
    eps = 1e-5

    w1 = params["w1"]                          # (C, Cmid)
    Cmid = w1.shape[1]
    Cmid_pad = _round_up(Cmid, 8)              # full f32 sublanes downstream

    # Fold BatchNorm (eval mode) + conv biases into the weights.
    s1 = params["bn1_gamma"] / jnp.sqrt(params["bn1_var"] + eps)   # (Cmid,)
    t1 = params["bn1_beta"] - params["bn1_mean"] * s1
    s2 = params["bn2_gamma"] / jnp.sqrt(params["bn2_var"] + eps)   # (1,)
    t2 = params["bn2_beta"] - params["bn2_mean"] * s2

    w1t = jnp.transpose(w1 * s1[None, :])                          # (Cmid, C)
    b1f = params["b1"] * s1 + t1                                   # (Cmid,)
    w2f = params["w2"][:, 0] * s2[0]                               # (Cmid,)
    b2f = (params["b2"] * s2 + t2).reshape(1)                      # (1,)

    if Cmid_pad != Cmid:    # zero rows: ReLU(0 + 0) * 0 contributes nothing
        pad = Cmid_pad - Cmid
        w1t = jnp.pad(w1t, ((0, pad), (0, 0)))
        b1f = jnp.pad(b1f, (0, pad))
        w2f = jnp.pad(w2f, (0, pad))

    # bf16 activations -> bf16 weights on the MXU (f32 accumulate in-kernel).
    mm_dtype = jnp.bfloat16 if x_nchw.dtype == jnp.bfloat16 else jnp.float32
    w1t = w1t.astype(mm_dtype)
    b1f = b1f.reshape(Cmid_pad, 1).astype(jnp.float32)
    w2f = w2f.reshape(Cmid_pad, 1).astype(jnp.float32)
    b2f = b2f.astype(jnp.float32)

    # No wrapper-side padding of x: partial last HW blocks are masked by Pallas.
    x3 = x_nchw.reshape(N, C, HW)
    Bn, tile = _choose_blocking(N, C, HW, x3.dtype.itemsize,
                                target_block_bytes, max_block_bytes)
    grid = (N // Bn, pl.cdiv(HW, tile))

    out = pl.pallas_call(
        lanet_kernel,
        out_shape=jax.ShapeDtypeStruct((N, 1, HW), x_nchw.dtype),
        grid=grid,
        in_specs=[
            pl.BlockSpec((Bn, C, tile), lambda i, j: (i, 0, j)),    # x block
            pl.BlockSpec((Cmid_pad, C), lambda i, j: (0, 0)),       # w1' (resident)
            pl.BlockSpec((Cmid_pad, 1), lambda i, j: (0, 0)),       # b1'
            pl.BlockSpec((Cmid_pad, 1), lambda i, j: (0, 0)),       # w2'
            pl.BlockSpec(memory_space=pltpu.MemorySpace.SMEM),      # b2' scalar
        ],
        out_specs=pl.BlockSpec((Bn, 1, tile), lambda i, j: (i, 0, j)),
        compiler_params=pltpu.CompilerParams(
            dimension_semantics=("parallel", "parallel")),
    )(x3, w1t, b1f, w2f, b2f)

    return out.reshape(N, 1, H, W)


def init_params(key, channel_num, ratio):
    """Deterministic synthetic parameters matching the PyTorch module shapes."""
    assert channel_num % ratio == 0
    cmid = channel_num // ratio
    ks = jax.random.split(key, 6)
    # PyTorch Conv2d weight (Cout, Cin, 1, 1) -> stored here as (Cin, Cout).
    w1 = jax.random.normal(ks[0], (channel_num, cmid), jnp.float32) * 0.1
    b1 = jax.random.normal(ks[1], (cmid,), jnp.float32) * 0.1
    w2 = jax.random.normal(ks[2], (cmid, 1), jnp.float32) * 0.1
    b2 = jax.random.normal(ks[3], (1,), jnp.float32) * 0.1
    return {
        "w1": w1, "b1": b1,
        "bn1_gamma": 1.0 + 0.1 * jax.random.normal(ks[4], (cmid,), jnp.float32),
        "bn1_beta": jnp.linspace(-0.1, 0.1, cmid, dtype=jnp.float32),
        "bn1_mean": jnp.linspace(-0.05, 0.05, cmid, dtype=jnp.float32),
        "bn1_var": jnp.ones((cmid,), jnp.float32) * 0.9,
        "w2": w2, "b2": b2,
        "bn2_gamma": jnp.array([1.05], jnp.float32),
        "bn2_beta": jnp.array([0.02], jnp.float32),
        "bn2_mean": jnp.array([0.01], jnp.float32),
        "bn2_var": jnp.array([0.95], jnp.float32),
    }


def reference_forward(x_nchw, params):
    """Pure-JAX reference (same math, no Pallas) for correctness checks."""
    eps = 1e-5
    N, C, H, W = x_nchw.shape
    xf = jnp.transpose(x_nchw, (0, 2, 3, 1)).reshape(-1, C).astype(jnp.float32)
    h = xf @ params["w1"] + params["b1"]
    h = (h - params["bn1_mean"]) / jnp.sqrt(params["bn1_var"] + eps) \
        * params["bn1_gamma"] + params["bn1_beta"]
    h = jnp.maximum(h, 0.0)
    y = h @ params["w2"] + params["b2"]
    y = (y - params["bn2_mean"]) / jnp.sqrt(params["bn2_var"] + eps) \
        * params["bn2_gamma"] + params["bn2_beta"]
    y = jax.nn.sigmoid(y)
    return jnp.transpose(y.reshape(N, H, W, 1), (0, 3, 1, 2))


if __name__ == "__main__":
    # Small shapes: channel_num=32, ratio=16 -> mid channels = 2 (padded to 8).
    N, C, H, W = 2, 32, 16, 16
    ratio = 16

    key = jax.random.PRNGKey(0)
    kx, kp = jax.random.split(key)
    x = jax.random.normal(kx, (N, C, H, W), jnp.float32)
    params = init_params(kp, C, ratio)

    # 1) f32, small feature map -> batch-blocked path (Bn=2, one grid step).
    out = jax.block_until_ready(lanet_forward(x, params))
    ref = reference_forward(x, params)
    assert out.shape == (N, 1, H, W)
    assert jnp.allclose(out, ref, atol=2e-5, rtol=1e-4), "f32 mismatch vs reference"

    # 2) f32, HW-tiled path with an unaligned (partial) last block; tiny block
    #    byte targets force tiling while keeping the test small.
    H2 = W2 = 40                                   # HW=1600, tile=512 -> partial tail
    x2 = jax.random.normal(kx, (N, C, H2, W2), jnp.float32)
    out2 = jax.block_until_ready(
        lanet_forward(x2, params, target_block_bytes=64 * 1024,
                      max_block_bytes=128 * 1024))
    ref2 = reference_forward(x2, params)
    assert out2.shape == (N, 1, H2, W2)
    assert jnp.allclose(out2, ref2, atol=2e-5, rtol=1e-4), "tiled mismatch vs reference"

    # 3) bf16 activation path (half the HBM read traffic), f32 accumulate.
    out_bf16 = jax.block_until_ready(lanet_forward(x.astype(jnp.bfloat16), params))
    assert out_bf16.dtype == jnp.bfloat16
    assert jnp.allclose(out_bf16.astype(jnp.float32), ref, atol=2e-2, rtol=2e-2), \
        "bf16 mismatch vs reference"

    print("KERNEL_OK")
</pallas_src>

<mosaic_0001>
module attributes {stable_mosaic.version = 11 : i64} {
  func.func @lanet_kernel(%arg0: i32, %arg1: i32, %arg2: memref<2x32x256xf32, #tpu.memory_space<vmem>>, %arg3: memref<8x32xf32, #tpu.memory_space<vmem>>, %arg4: memref<8x1xf32, #tpu.memory_space<vmem>>, %arg5: memref<8x1xf32, #tpu.memory_space<vmem>>, %arg6: memref<1xf32, #tpu.memory_space<smem>>, %arg7: memref<2x1x256xf32, #tpu.memory_space<vmem>>) attributes {dimension_semantics = [#tpu.dimension_semantics<parallel>, #tpu.dimension_semantics<parallel>], iteration_bounds = array<i64: 1, 1>, scalar_prefetch = 0 : i64, scratch_operands = 0 : i64, tpu.core_type = #tpu.core_type<tc>, window_params = [{transform_indices = @transform_0, window_bounds = array<i64: 2, 32, 256>}, {pipeline_mode = #tpu.pipeline_mode<synchronous>, transform_indices = @transform_1, window_bounds = array<i64: 8, 32>}, {pipeline_mode = #tpu.pipeline_mode<synchronous>, transform_indices = @transform_2, window_bounds = array<i64: 8, 1>}, {pipeline_mode = #tpu.pipeline_mode<synchronous>, transform_indices = @transform_3, window_bounds = array<i64: 8, 1>}, {transform_indices = @transform_4, window_bounds = array<i64: 1>}, {transform_indices = @transform_5, window_bounds = array<i64: 2, 1, 256>}]} {
    %c0 = arith.constant 0 : index
    %c0_0 = arith.constant 0 : index
    %0 = vector.load %arg3[%c0, %c0_0] : memref<8x32xf32, #tpu.memory_space<vmem>>, vector<8x32xf32>
    %c0_1 = arith.constant 0 : index
    %c0_2 = arith.constant 0 : index
    %1 = vector.load %arg4[%c0_1, %c0_2] : memref<8x1xf32, #tpu.memory_space<vmem>>, vector<8x1xf32>
    %c0_3 = arith.constant 0 : index
    %c0_4 = arith.constant 0 : index
    %2 = vector.load %arg5[%c0_3, %c0_4] : memref<8x1xf32, #tpu.memory_space<vmem>>, vector<8x1xf32>
    %c0_5 = arith.constant 0 : index
    %3 = memref.load %arg6[%c0_5] : memref<1xf32, #tpu.memory_space<smem>>
    %c0_6 = arith.constant 0 : index
    %c0_7 = arith.constant 0 : index
    %c0_8 = arith.constant 0 : index
    %4 = vector.load %arg2[%c0_6, %c0_7, %c0_8] : memref<2x32x256xf32, #tpu.memory_space<vmem>>, vector<1x32x256xf32>
    %5 = vector.shape_cast %4 : vector<1x32x256xf32> to vector<32x256xf32>
    %cst = arith.constant dense<0.000000e+00> : vector<8x256xf32>
    %6 = tpu.matmul %0, %5, %cst {dimension_numbers = #tpu.dot_dimension_numbers<[1], [0], [0], [1], [0, 0, 1, 1], [], []>} : vector<8x32xf32>, vector<32x256xf32>, vector<8x256xf32> -> vector<8x256xf32>
    %7 = vector.broadcast %1 : vector<8x1xf32> to vector<8x256xf32>
    %8 = arith.addf %6, %7 : vector<8x256xf32>
    %cst_9 = arith.constant 0.000000e+00 : f32
    %9 = vector.broadcast %cst_9 : f32 to vector<8x256xf32>
    %10 = arith.maximumf %8, %9 : vector<8x256xf32>
    %11 = vector.broadcast %2 : vector<8x1xf32> to vector<8x256xf32>
    %12 = arith.mulf %10, %11 : vector<8x256xf32>
    %cst_10 = arith.constant dense<0.000000e+00> : vector<256xf32>
    %13 = vector.multi_reduction <add>, %12, %cst_10 [0] : vector<8x256xf32> to vector<256xf32>
    %14 = vector.shape_cast %13 : vector<256xf32> to vector<1x256xf32>
    %15 = vector.broadcast %3 : f32 to vector<1x256xf32>
    %16 = arith.addf %14, %15 : vector<1x256xf32>
    %17 = arith.negf %16 : vector<1x256xf32>
    %18 = math.exp %17 : vector<1x256xf32>
    %cst_11 = arith.constant 1.000000e+00 : f32
    %19 = vector.broadcast %cst_11 : f32 to vector<1x256xf32>
    %20 = arith.addf %19, %18 : vector<1x256xf32>
    %21 = arith.divf %19, %20 : vector<1x256xf32>
    %c0_12 = arith.constant 0 : index
    %c0_13 = arith.constant 0 : index
    %c0_14 = arith.constant 0 : index
    %22 = vector.load %arg7[%c0_12, %c0_13, %c0_14] : memref<2x1x256xf32, #tpu.memory_space<vmem>>, vector<1x1x256xf32>
    %23 = vector.shape_cast %22 : vector<1x1x256xf32> to vector<1x256xf32>
    %24 = vector.shape_cast %21 : vector<1x256xf32> to vector<1x1x256xf32>
    tpu.vector_store %arg7[%c0_12, %c0_13, %c0_14], %24 {strides = array<i32>} : memref<2x1x256xf32, #tpu.memory_space<vmem>>, vector<1x1x256xf32>,
    %c1 = arith.constant 1 : index
    %c0_15 = arith.constant 0 : index
    %c0_16 = arith.constant 0 : index
    %25 = vector.load %arg2[%c1, %c0_15, %c0_16] : memref<2x32x256xf32, #tpu.memory_space<vmem>>, vector<1x32x256xf32>
    %26 = vector.shape_cast %25 : vector<1x32x256xf32> to vector<32x256xf32>
    %cst_17 = arith.constant dense<0.000000e+00> : vector<8x256xf32>
    %27 = tpu.matmul %0, %26, %cst_17 {dimension_numbers = #tpu.dot_dimension_numbers<[1], [0], [0], [1], [0, 0, 1, 1], [], []>} : vector<8x32xf32>, vector<32x256xf32>, vector<8x256xf32> -> vector<8x256xf32>
    %28 = vector.broadcast %1 : vector<8x1xf32> to vector<8x256xf32>
    %29 = arith.addf %27, %28 : vector<8x256xf32>
    %cst_18 = arith.constant 0.000000e+00 : f32
    %30 = vector.broadcast %cst_18 : f32 to vector<8x256xf32>
    %31 = arith.maximumf %29, %30 : vector<8x256xf32>
    %32 = vector.broadcast %2 : vector<8x1xf32> to vector<8x256xf32>
    %33 = arith.mulf %31, %32 : vector<8x256xf32>
    %cst_19 = arith.constant dense<0.000000e+00> : vector<256xf32>
    %34 = vector.multi_reduction <add>, %33, %cst_19 [0] : vector<8x256xf32> to vector<256xf32>
    %35 = vector.shape_cast %34 : vector<256xf32> to vector<1x256xf32>
    %36 = vector.broadcast %3 : f32 to vector<1x256xf32>
    %37 = arith.addf %35, %36 : vector<1x256xf32>
    %38 = arith.negf %37 : vector<1x256xf32>
    %39 = math.exp %38 : vector<1x256xf32>
    %cst_20 = arith.constant 1.000000e+00 : f32
    %40 = vector.broadcast %cst_20 : f32 to vector<1x256xf32>
    %41 = arith.addf %40, %39 : vector<1x256xf32>
    %42 = arith.divf %40, %41 : vector<1x256xf32>
    %c1_21 = arith.constant 1 : index
    %c0_22 = arith.constant 0 : index
    %c0_23 = arith.constant 0 : index
    %43 = vector.load %arg7[%c1_21, %c0_22, %c0_23] : memref<2x1x256xf32, #tpu.memory_space<vmem>>, vector<1x1x256xf32>
    %44 = vector.shape_cast %43 : vector<1x1x256xf32> to vector<1x256xf32>
    %45 = vector.shape_cast %42 : vector<1x256xf32> to vector<1x1x256xf32>
    tpu.vector_store %arg7[%c1_21, %c0_22, %c0_23], %45 {strides = array<i32>} : memref<2x1x256xf32, #tpu.memory_space<vmem>>, vector<1x1x256xf32>,
    return
  }
  func.func @transform_0(%arg0: i32, %arg1: i32) -> (i32, i32, i32) {
    %c0_i32 = arith.constant 0 : i32
    %c0_i32_0 = arith.constant 0 : i32
    return %arg0, %c0_i32, %arg1 : i32, i32, i32
  }
  func.func @transform_1(%arg0: i32, %arg1: i32) -> (i32, i32) {
    %c0_i32 = arith.constant 0 : i32
    %c0_i32_0 = arith.constant 0 : i32
    %c0_i32_1 = arith.constant 0 : i32
    return %c0_i32, %c0_i32_0 : i32, i32
  }
  func.func @transform_2(%arg0: i32, %arg1: i32) -> (i32, i32) {
    %c0_i32 = arith.constant 0 : i32
    %c0_i32_0 = arith.constant 0 : i32
    %c0_i32_1 = arith.constant 0 : i32
    return %c0_i32, %c0_i32_0 : i32, i32
  }
  func.func @transform_3(%arg0: i32, %arg1: i32) -> (i32, i32) {
    %c0_i32 = arith.constant 0 : i32
    %c0_i32_0 = arith.constant 0 : i32
    %c0_i32_1 = arith.constant 0 : i32
    return %c0_i32, %c0_i32_0 : i32, i32
  }
  func.func @transform_4(%arg0: i32, %arg1: i32) -> i32 {
    %c0_i32 = arith.constant 0 : i32
    %c0_i32_0 = arith.constant 0 : i32
    return %c0_i32 : i32
  }
  func.func @transform_5(%arg0: i32, %arg1: i32) -> (i32, i32, i32) {
    %c0_i32 = arith.constant 0 : i32
    %c0_i32_0 = arith.constant 0 : i32
    return %arg0, %c0_i32, %arg1 : i32, i32, i32
  }
}

</mosaic_0001>

<bundles_post_ra>
// kernel: tpu_custom_call.1
= control target key start
LH: loop header
LB: loop body
LE: loop exit
PB: predicated region body
PF: predicated region fallthrough
CT: control target
= control target key end

     0   :  { %11 = vsyncpa [#allocation4], 0  ;;  %s505_s0 = inlined_call_operand.hbm [shape: f32[2,32,256], index: 0, kind: input, shape index: {}]   ;;  %s506_s1 = inlined_call_operand.vmem [shape: f32[8,32], index: 1, kind: input, shape index: {}]   ;;  %s507_s2 = inlined_call_operand.vmem [shape: f32[8,1], index: 2, kind: input, shape index: {}]   ;;  %s508_s3 = inlined_call_operand.vmem [shape: f32[8,1], index: 3, kind: input, shape index: {}]   ;;  %s509_s4 = inlined_call_operand.<no memory space> [shape: f32[1], index: 4, kind: input, shape index: {}]   ;;  %s510_s5 = inlined_call_operand.hbm [shape: f32[2,1,256], index: 5, kind: output, shape index: {}]  }
   0x1   :  { %12 = vsyncpa [#allocation5], 0  ;;  %s430_s18 = smov [#allocation3]   ;;  %s382_s22 = scalar_lea.hbm %s505_s0, 2048 }
   0x2   :  { %s18_s19 = sshll.u32 %s430_s18, 4  ;;  %p383_p0 = scmp.ne.s32.totalorder %s505_s0, %s382_s22  ;;  %s19_s19 = int_to_ptr.vmem [resolvable:$true] %s18_s19 }
   0x3   :  { %p386_p1 = scmp.lt.u32.totalorder %s382_s22, %s505_s0 }
   0x5   :  { %p388_p2 = pnand %p386_p1, %p383_p0 }
   0x7   :  { %391 = shalt.err (!%p388_p2)
}
   0x8   :  { %s392_s27 = scalar_lea.vmem %s19_s19, 2048  ;;  %p397_p4 = scmp.lt.s32.totalorder %s19_s19, %s19_s19 }
   0x9   :  { %p393_p3 = scmp.ne.s32.totalorder %s19_s19, %s392_s27  ;;  %p398_p5 = scmp.lt.s32.totalorder %s392_s27, %s392_s27 }
   0xb   :  { %p399_p6 = por %p398_p5, %p397_p4 }
   0xd   :  { %p400_p7 = pnand %p399_p6, %p393_p3 }
   0xf   :  { %403 = shalt.err (!%p400_p7)
}
  0x10   :  { %s431_s28 = smov 256   ;;  %s432_s29 = smov 16  }
  0x11   :  { %24 = dma.hbm_to_vmem [thread:$0]  %s505_s0, 2048, %s19_s19, [#allocation4], %s431_s28, %s431_s28, %s432_s29  }
  0x12   :  { %426 = dma.done.wait [#allocation4], 2048  }
  0x13   :  { %427 = vsyncadd [#allocation4], 4294965248  ;;  %v433_v0 = vmov 0.0   ;;  %v434_v1 = vmov 0   ;;  %v41_v2 = vld [vmem:[#allocation3 + $0x8] sm:$0xff]  ;;  %v43_v3 = vld [vmem:[#allocation3 + $0x18] sm:$0xff] }
  0x14   :  { %121 = vmatprep.mubr.f32.mxu0 %v433_v0  ;;  %260 = vmatprep.mubr.f32.mxu1 %v433_v0  ;;  %v189_v4 = vld [vmem:[#allocation3 + $0x48] sm:$0xff]  ;;  %v340_v5 = vpack.c.bf16 %v43_v3, %v41_v2  ;;  %v191_v6 = vld [vmem:[#allocation3 + $0x58] sm:$0xff]  ;;  %v40_v7 = vld [vmem:[#allocation3] sm:$0xff]  ;;  %vm53_vm0 = vcmask 261120   ;;  %v149_v0 = vstv %s509_s4 }
  0x15   :  { %365 = vset.pattern.permute.xlu0 %v434_v1  ;;  %v42_v8 = vld [vmem:[#allocation3 + $0x10] sm:$0xff]  ;;  %v348_v9 = vpack.c.bf16 %v191_v6, %v189_v4  ;;  %v188_v11 = vld [vmem:[#allocation3 + $0x40] sm:$0xff]  ;;  %v45_v13 = vld [vmem:[#allocation3 + $0x28] sm:$0xff] }
  0x16   :  { %v342_v10 = vpack.c.bf16 %v42_v8, %v40_v7  ;;  %v190_v12 = vld [vmem:[#allocation3 + $0x50] sm:$0xff]  ;;  %341 = vmatprep.subr.bf16.mxu0 %v340_v5  ;;  %v47_v15 = vld [vmem:[#allocation3 + $0x38] sm:$0xff]  ;;  %v193_v16 = vld [vmem:[#allocation3 + $0x68] sm:$0xff] }
  0x17   :  { %v350_v14 = vpack.c.bf16 %v190_v12, %v188_v11  ;;  %v195_v17 = vld [vmem:[#allocation3 + $0x78] sm:$0xff]  ;;  %349 = vmatprep.subr.bf16.mxu1 %v348_v9  ;;  %v344_v18 = vpack.c.bf16 %v47_v15, %v45_v13  ;;  %v44_v20 = vld [vmem:[#allocation3 + $0x20] sm:$0xff]  ;;  %v46_v21 = vld [vmem:[#allocation3 + $0x30] sm:$0xff] }
  0x18   :  { %343 = vmatpush1.bf16.msra.mxu0 %v342_v10  ;;  %v352_v19 = vpack.c.bf16 %v195_v17, %v193_v16  ;;  %v192_v22 = vld [vmem:[#allocation3 + $0x60] sm:$0xff]  ;;  %v346_v23 = vpack.c.bf16 %v46_v21, %v44_v20  ;;  %v194_v24 = vld [vmem:[#allocation3 + $0x70] sm:$0xff] }
  0x19   :  { %351 = vmatpush1.bf16.msra.mxu1 %v350_v14  ;;  %v37_v25 = vld [vmem:[%s507_s2] sm:$0xff]  ;;  %345 = vmatprep.subr.bf16.mxu0 %v344_v18  ;;  %v354_v26 = vpack.c.bf16 %v194_v24, %v192_v22  ;;  %v435_v24 = vmov 1966171168  }
  0x1a   :  { %353 = vmatprep.subr.bf16.mxu1 %v352_v19  ;;  %50 = vperm.xlu0 %365, %v37_v25   ;;  %v36_v27 = vld [vmem:[%s506_s1] sm:$0xff]  ;;  %v168_v25 = vunpack.c.l.s4 %v435_v24 }
  0x1b   :  { %v38_v28 = vld [vmem:[%s508_s3] sm:$0xff]  ;;  %s436_s3 = smov [#allocation6]  }
  0x1c   :  { %347 = vmatpush1.bf16.msra.mxu0 %v346_v23  ;;  %s322_s4 = sshll.u32 %s436_s3, 4  ;;  %s323_s4 = int_to_ptr.vmem [resolvable:$true] %s322_s4 }
  0x1d   :  { %355 = vmatpush1.bf16.msra.mxu1 %v354_v26  ;;  %v170_v26 = vlaneseq  ;;  %s404_s12 = scalar_lea.vmem %s323_s4, 64  ;;  %p409_p9 = scmp.lt.s32.totalorder %s323_s4, %s323_s4 }
  0x1e   :  { %132 = vperm.xlu0 %365, %v38_v28   ;;  %p405_p8 = scmp.ne.s32.totalorder %s323_s4, %s404_s12  ;;  %p410_p10 = scmp.lt.s32.totalorder %s404_s12, %s404_s12 }
  0x1f   :  { %334 = vmatmul.mubr.msk.f32.vlgmr.msra.gmra.mrb[0].mxu0 %vm53_vm0, %v36_v27  ;;  %v171_v28 = vshrl.u32 %v170_v26, 7  ;;  %vm184_vm1 = vcmp.lt.s32.totalorder %v170_v26, 256 }
  0x20   :  { %337 = vmatmul.mubr.msk.f32.vlgmr.msra.gmra.mrb[0].mxu1 %vm53_vm0, %v36_v27  ;;  %v169_v27 = vunpack.c.0.s8 %v168_v25  ;;  %p411_p11 = por %p410_p10, %p409_p9 }
  0x22   :  { %p412_p12 = pnand %p411_p11, %p405_p8 }
  0x99   :  { %v51_v29 = vpop.permute.xlu0 %50 }
  0x9d   :  { %v133_v40 = vpop.permute.xlu0 %132 }
  0xf2   :  { %v123_v30 = vpop.f32.mrb[0].mxu0 }
  0xf3   :  { %v124_v31 = vadd.f32 %v123_v30, %v51_v29  ;;  %v262_v32 = vpop.f32.mrb[0].mxu1  ;;  %v125_v33 = vpop.f32.mrb[1].mxu0 }
  0xf4   :  { %v263_v34 = vadd.f32 %v262_v32, %v51_v29  ;;  %v126_v35 = vadd.f32 %v125_v33, %v51_v29  ;;  %v264_v36 = vpop.f32.mrb[1].mxu1 }
  0xf5   :  { %v128_v37 = vmax.f32 %v124_v31, 0.0  ;;  %v265_v38 = vadd.f32 %v264_v36, %v51_v29  ;;  %v172_v31 = vsub.s32 %v169_v27, %v171_v28 }
  0xf6   :  { %v267_v39 = vmax.f32 %v263_v34, 0.0  ;;  %v129_v41 = vmax.f32 %v126_v35, 0.0 }
  0xf7   :  { %v135_v42 = vmul.f32 %v133_v40, %v128_v37  ;;  %v268_v43 = vmax.f32 %v265_v38, 0.0 }
  0xf8   :  { %v269_v44 = vmul.f32 %v267_v39, %v133_v40  ;;  %v136_v45 = vmul.f32 %v133_v40, %v129_v41 }
  0xf9   :  { %v137_v46 = vrot.slane %v135_v42, 4  ;;  %v270_v47 = vmul.f32 %v268_v43, %v133_v40 }
  0xfa   :  { %v271_v48 = vrot.slane %v269_v44, 4  ;;  %v143_v49 = vrot.slane %v136_v45, 4 }
  0xfb   :  { %v138_v50 = vadd.f32 %v137_v46, %v135_v42  ;;  %v277_v51 = vrot.slane %v270_v47, 4 }
  0xfc   :  { %v272_v52 = vadd.f32 %v271_v48, %v269_v44  ;;  %v144_v53 = vadd.f32 %v143_v49, %v136_v45 }
  0xfd   :  { %v139_v54 = vrot.slane %v138_v50, 2  ;;  %v278_v55 = vadd.f32 %v277_v51, %v270_v47 }
  0xfe   :  { %v273_v56 = vrot.slane %v272_v52, 2  ;;  %v145_v57 = vrot.slane %v144_v53, 2 }
  0xff   :  { %v140_v58 = vadd.f32 %v139_v54, %v138_v50  ;;  %v279_v59 = vrot.slane %v278_v55, 2 }
 0x100   :  { %v274_v60 = vadd.f32 %v273_v56, %v272_v52  ;;  %v146_v61 = vadd.f32 %v145_v57, %v144_v53 }
 0x101   :  { %v141_v62 = vrot.slane %v140_v58, 1  ;;  %v280_v63 = vadd.f32 %v279_v59, %v278_v55 }
 0x102   :  { %v275_v1 = vrot.slane %v274_v60, 1  ;;  %v147_v2 = vrot.slane %v146_v61, 1 }
 0x103   :  { %v142_v3 = vadd.f32 %v141_v62, %v140_v58  ;;  %v281_v4 = vrot.slane %v280_v63, 1 }
 0x104   :  { %v276_v5 = vadd.f32 %v275_v1, %v274_v60  ;;  %v148_v6 = vadd.f32 %v147_v2, %v146_v61 }
 0x105   :  { %v150_v7 = vadd.f32 %v149_v0, %v142_v3  ;;  %v282_v8 = vadd.f32 %v281_v4, %v280_v63 }
 0x106   :  { %v283_v9 = vadd.f32 %v276_v5, %v149_v0  ;;  %v151_v10 = vadd.f32 %v149_v0, %v148_v6 }
 0x107   :  { %v335_v11 = vmul.f32 -1.442695, %v150_v7  ;;  %v284_v12 = vadd.f32 %v282_v8, %v149_v0 }
 0x108   :  { %v338_v13 = vmul.f32 -1.442695, %v283_v9  ;;  %v336_v14 = vmul.f32 -1.442695, %v151_v10 }
 0x109   :  { %366 = vpow2.f32 %v335_v11  ;;  %v339_v15 = vmul.f32 -1.442695, %v284_v12 }
 0x10a   :  { %368 = vpow2.f32 %v338_v13 }
 0x10b   :  { %370 = vpow2.f32 %v336_v14 }
 0x10c   :  { %372 = vpow2.f32 %v339_v15 }
 0x113   :  { %v367_v16 = vpop.eup %366 }
 0x114   :  { %v369_v17 = vpop.eup %368  ;;  %v158_v18 = vadd.f32 1.0, %v367_v16 }
 0x115   :  { %v371_v19 = vpop.eup %370  ;;  %v291_v20 = vadd.f32 1.0, %v369_v17 }
 0x116   :  { %v373_v21 = vpop.eup %372  ;;  %374 = vrcp.f32 %v158_v18  ;;  %v159_v22 = vadd.f32 1.0, %v371_v19 }
 0x117   :  { %376 = vrcp.f32 %v291_v20  ;;  %v292_v23 = vadd.f32 1.0, %v373_v21 }
 0x118   :  { %378 = vrcp.f32 %v159_v22 }
 0x119   :  { %380 = vrcp.f32 %v292_v23 }
 0x120   :  { %v375_v29 = vpop.eup %374 }
 0x121   :  { %v377_v30 = vpop.eup %376 }
 0x122   :  { %v379_v32 = vpop.eup %378 }
 0x123   :  { %v381_v33 = vpop.eup %380  ;;  %v166_v34 = vcombine.low %v375_v29, %v379_v32 }
 0x124   :  { %v299_v35 = vcombine.low %v377_v30, %v381_v33 }
 0x125   :  { %v173_v36 = vrot.slane %v166_v34, %v172_v31 }
 0x126   :  { %v306_v37 = vrot.slane %v299_v35, %v172_v31 }
 0x127   :  { %v180_v38 = vrot.slane %v173_v36, %v172_v31 }
 0x128   :  { %v313_v39 = vrot.slane %v306_v37, %v172_v31 }
 0x129   :  { %186 = vst.msk [vmem:[#allocation6] sm:$0x3] %vm184_vm1, %v180_v38 }
 0x12a   :  { %316 = vst.msk [vmem:[#allocation6 + $0x2] sm:$0x3] %vm184_vm1, %v313_v39 }
 0x12b   :  { %415 = shalt.err (!%p412_p12)
}
 0x12c   :  { %s416_s15 = scalar_lea.hbm %s510_s5, 64 }
 0x12d   :  { %p417_p13 = scmp.ne.s32.totalorder %s510_s5, %s416_s15  ;;  %p420_p0 = scmp.lt.u32.totalorder %s416_s15, %s510_s5 }
 0x12f   :  { %p422_p1 = pnand %p420_p0, %p417_p13 }
 0x131   :  { %425 = shalt.err (!%p422_p1)
}
 0x132   :  { %s437_s20 = smov 32   ;;  %s438_s21 = smov 2  }
 0x133   :  { %328 = dma.vmem_to_hbm [thread:$0]  %s323_s4, 64, %s510_s5, [#allocation5], %s437_s20, %s437_s20, %s438_s21  }
 0x134   :  { %428 = dma.done.wait [#allocation5], 64  }
 0x135   :  { %429 = vsyncadd [#allocation5], 4294967232 }
 0x136   :  { %332 = vsyncpa [#allocation4], 1 }
 0x137   :  { %333 = vsyncpa [#allocation5], 1 }

</bundles_post_ra>
